<compile_context>
chip_gen: v7x
topology: tpu7x:2x2x1
jax: 0.10.0
libtpu: 0.0.40
codegen_flags: <defaults>
</compile_context>

<pallas_src>
import functools

import jax
import jax.numpy as jnp
from jax.experimental import pallas as pl
from jax.experimental.pallas import tpu as pltpu

HIDDEN = 30          # fc1 width, fixed by the PyTorch module
_LANE = 128
_SUBLANE = 8
_MAX_TB = 4096       # batch-tile cap (rows); ~8.5 MiB VMEM worst case, fits every gen


def _round_up(x, m):
    return ((x + m - 1) // m) * m


def _mlp_kernel(x_ref, w1_ref, b1_ref, w2t_ref, b2t_ref, o_ref):
    # fc1: (TB, in) @ (in, HID_PAD) + (1, HID_PAD), then ReLU.
    # Zero-padded hidden columns stay exactly zero (ReLU(0) = 0).
    h = jnp.dot(x_ref[...], w1_ref[...], preferred_element_type=jnp.float32)
    h = jnp.maximum(h + b1_ref[...], 0.0)
    # One XLU transpose per tile so fc2's output (and its HBM store) is
    # lane-dense over the batch dimension.
    h_t = h.T                                                   # (HID_PAD, TB)
    # fc2 in transposed space: (NACT_PAD, HID_PAD) @ (HID_PAD, TB) + (NACT_PAD, 1).
    q_t = jnp.dot(w2t_ref[...], h_t, preferred_element_type=jnp.float32)
    o_ref[...] = (q_t + b2t_ref[...]).astype(o_ref.dtype)


def prepare_params(w1, b1, w2, b2):
    """Pad / lay out PyTorch-layout params for the kernel. Call ONCE and reuse.

    PyTorch layout: w1 (30, in), b1 (30,), w2 (nb_action, 30), b2 (nb_action,).
    Kernel layout : w1_p (in, HID_PAD), b1_p (1, HID_PAD),
                    w2t_p (NACT_PAD, HID_PAD), b2t_p (NACT_PAD, 1).
    """
    hidden, input_size = w1.shape
    nb_action = w2.shape[0]
    assert b1.shape == (hidden,) and w2.shape == (nb_action, hidden) and b2.shape == (nb_action,)
    hid_pad = _round_up(hidden, _LANE)
    nact_pad = _round_up(nb_action, _SUBLANE)

    w1_p = jnp.pad(w1.T.astype(jnp.float32), ((0, 0), (0, hid_pad - hidden)))
    b1_p = jnp.pad(b1.astype(jnp.float32).reshape(1, hidden),
                   ((0, 0), (0, hid_pad - hidden)))
    w2t_p = jnp.pad(w2.astype(jnp.float32),
                    ((0, nact_pad - nb_action), (0, hid_pad - hidden)))
    b2t_p = jnp.pad(b2.astype(jnp.float32).reshape(nb_action, 1),
                    ((0, nact_pad - nb_action), (0, 0)))
    return w1_p, b1_p, w2t_p, b2t_p


@functools.partial(jax.jit, static_argnames=("nb_action",))
def network_forward(state, params, *, nb_action):
    """Pallas implementation of Network.forward.

    state:  (B, input_size) float32
    params: output of prepare_params (padded, kernel-layout weights)
    returns q_values: (B, nb_action) float32
    """
    w1_p, b1_p, w2t_p, b2t_p = params
    B, input_size = state.shape
    hid_pad = w1_p.shape[1]
    nact_pad = w2t_p.shape[0]

    # --- batch tiling: TB multiple of 128 (lane-dense transposed output);
    #     >= 2 tiles once B grows so both v7x TensorCores get work. ---
    b128 = _round_up(B, _LANE)
    n_tiles = max(1, -(-b128 // _MAX_TB))
    if b128 > 256 and n_tiles < 2:
        n_tiles = 2
    tb = _round_up(-(-b128 // n_tiles), _LANE)
    b_pad = _round_up(B, tb)
    grid = (b_pad // tb,)

    if b_pad != B:
        state = jnp.pad(state, ((0, b_pad - B), (0, 0)))

    const_spec = lambda shp: pl.BlockSpec(shp, lambda i: (0, 0))  # VMEM-resident weights

    cost = pl.CostEstimate(
        flops=2 * b_pad * (input_size * hid_pad + hid_pad * nact_pad),
        transcendentals=0,
        bytes_accessed=4 * (b_pad * input_size                  # state read
                            + input_size * hid_pad + hid_pad    # w1_p, b1_p
                            + nact_pad * hid_pad + nact_pad     # w2t_p, b2t_p
                            + nact_pad * b_pad),                # lane-dense output
    )

    out_t = pl.pallas_call(
        _mlp_kernel,
        out_shape=jax.ShapeDtypeStruct((nact_pad, b_pad), jnp.float32),
        grid=grid,
        in_specs=[
            pl.BlockSpec((tb, input_size), lambda i: (i, 0)),   # state tile, pipelined
            const_spec(w1_p.shape),
            const_spec(b1_p.shape),
            const_spec(w2t_p.shape),
            const_spec(b2t_p.shape),
        ],
        out_specs=pl.BlockSpec((nact_pad, tb), lambda i: (0, i)),
        compiler_params=pltpu.CompilerParams(
            dimension_semantics=("parallel",),      # batch tiles across TCs (v7x)
            vmem_limit_bytes=32 * 1024 * 1024,      # safe inside v7x's 64 MiB VMEM
        ),
        cost_estimate=cost,
    )(state, w1_p, b1_p, w2t_p, b2t_p)

    # Restore the logical (B, nb_action) layout; tiny (nb_action, B) slice+transpose.
    return out_t[:nb_action, :B].T


def init_params(key, input_size, nb_action):
    # nn.Linear-style init (U(-1/sqrt(fan_in), 1/sqrt(fan_in))), PyTorch layout.
    k1, k2, k3, k4 = jax.random.split(key, 4)
    bound1 = 1.0 / float(input_size) ** 0.5
    bound2 = 1.0 / float(HIDDEN) ** 0.5
    w1 = jax.random.uniform(k1, (HIDDEN, input_size), jnp.float32, -bound1, bound1)
    b1 = jax.random.uniform(k2, (HIDDEN,), jnp.float32, -bound1, bound1)
    w2 = jax.random.uniform(k3, (nb_action, HIDDEN), jnp.float32, -bound2, bound2)
    b2 = jax.random.uniform(k4, (nb_action,), jnp.float32, -bound2, bound2)
    return w1, b1, w2, b2


def _reference(state, w1, b1, w2, b2):
    # Same math as the PyTorch module (torch weight layout: y = x @ W.T + b).
    return jnp.maximum(state @ w1.T + b1, 0.0) @ w2.T + b2


if __name__ == "__main__":
    input_size = 5
    nb_action = 3

    key = jax.random.PRNGKey(0)
    k_params, k_small, k_big = jax.random.split(key, 3)
    w1, b1, w2, b2 = init_params(k_params, input_size, nb_action)

    # Pad / transpose the weights ONCE (outside the per-call hot path) and reuse.
    params = prepare_params(w1, b1, w2, b2)

    # Small batch: single 128-row tile (batch zero-padded inside the wrapper).
    state_small = jax.random.normal(k_small, (4, input_size), jnp.float32)
    q_small = jax.block_until_ready(
        network_forward(state_small, params, nb_action=nb_action))
    ref_small = _reference(state_small, w1, b1, w2, b2)
    assert q_small.shape == (4, nb_action)
    assert jnp.allclose(q_small, ref_small, atol=1e-5, rtol=1e-5)

    # Larger batch: multi-tile grid (2 tiles -> both v7x TensorCores busy).
    state_big = jax.random.normal(k_big, (600, input_size), jnp.float32)
    q_big = jax.block_until_ready(
        network_forward(state_big, params, nb_action=nb_action))
    ref_big = _reference(state_big, w1, b1, w2, b2)
    assert q_big.shape == (600, nb_action)
    assert jnp.allclose(q_big, ref_big, atol=1e-5, rtol=1e-5)

    print("KERNEL_OK")
</pallas_src>

<mosaic_0001>
module attributes {stable_mosaic.version = 11 : i64} {
  func.func @_mlp_kernel(%arg0: i32, %arg1: memref<128x5xf32, #tpu.memory_space<vmem>>, %arg2: memref<5x128xf32, #tpu.memory_space<vmem>>, %arg3: memref<1x128xf32, #tpu.memory_space<vmem>>, %arg4: memref<8x128xf32, #tpu.memory_space<vmem>>, %arg5: memref<8x1xf32, #tpu.memory_space<vmem>>, %arg6: memref<8x128xf32, #tpu.memory_space<vmem>>) attributes {dimension_semantics = [#tpu.dimension_semantics<parallel>], iteration_bounds = array<i64: 1>, scalar_prefetch = 0 : i64, scratch_operands = 0 : i64, tpu.core_type = #tpu.core_type<tc>, window_params = [{transform_indices = @transform_0, window_bounds = array<i64: 128, 5>}, {pipeline_mode = #tpu.pipeline_mode<synchronous>, transform_indices = @transform_1, window_bounds = array<i64: 5, 128>}, {pipeline_mode = #tpu.pipeline_mode<synchronous>, transform_indices = @transform_2, window_bounds = array<i64: 1, 128>}, {pipeline_mode = #tpu.pipeline_mode<synchronous>, transform_indices = @transform_3, window_bounds = array<i64: 8, 128>}, {pipeline_mode = #tpu.pipeline_mode<synchronous>, transform_indices = @transform_4, window_bounds = array<i64: 8, 1>}, {transform_indices = @transform_5, window_bounds = array<i64: 8, 128>}]} {
    %c0 = arith.constant 0 : index
    %c0_0 = arith.constant 0 : index
    %0 = vector.load %arg1[%c0, %c0_0] : memref<128x5xf32, #tpu.memory_space<vmem>>, vector<128x5xf32>
    %c0_1 = arith.constant 0 : index
    %c0_2 = arith.constant 0 : index
    %1 = vector.load %arg2[%c0_1, %c0_2] : memref<5x128xf32, #tpu.memory_space<vmem>>, vector<5x128xf32>
    %cst = arith.constant dense<0.000000e+00> : vector<128x128xf32>
    %2 = tpu.matmul %0, %1, %cst {dimension_numbers = #tpu.dot_dimension_numbers<[1], [0], [0], [1], [0, 0, 1, 1], [], []>} : vector<128x5xf32>, vector<5x128xf32>, vector<128x128xf32> -> vector<128x128xf32>
    %c0_3 = arith.constant 0 : index
    %c0_4 = arith.constant 0 : index
    %3 = vector.load %arg3[%c0_3, %c0_4] : memref<1x128xf32, #tpu.memory_space<vmem>>, vector<1x128xf32>
    %4 = vector.broadcast %3 : vector<1x128xf32> to vector<128x128xf32>
    %5 = arith.addf %2, %4 : vector<128x128xf32>
    %cst_5 = arith.constant 0.000000e+00 : f32
    %6 = vector.broadcast %cst_5 : f32 to vector<128x128xf32>
    %7 = arith.maximumf %5, %6 : vector<128x128xf32>
    %8 = tpu.transpose %7, [1, 0] : vector<128x128xf32> -> vector<128x128xf32>
    %c0_6 = arith.constant 0 : index
    %c0_7 = arith.constant 0 : index
    %9 = vector.load %arg4[%c0_6, %c0_7] : memref<8x128xf32, #tpu.memory_space<vmem>>, vector<8x128xf32>
    %cst_8 = arith.constant dense<0.000000e+00> : vector<8x128xf32>
    %10 = tpu.matmul %9, %8, %cst_8 {dimension_numbers = #tpu.dot_dimension_numbers<[1], [0], [0], [1], [0, 0, 1, 1], [], []>} : vector<8x128xf32>, vector<128x128xf32>, vector<8x128xf32> -> vector<8x128xf32>
    %c0_9 = arith.constant 0 : index
    %c0_10 = arith.constant 0 : index
    %11 = vector.load %arg5[%c0_9, %c0_10] : memref<8x1xf32, #tpu.memory_space<vmem>>, vector<8x1xf32>
    %12 = vector.broadcast %11 : vector<8x1xf32> to vector<8x128xf32>
    %13 = arith.addf %10, %12 : vector<8x128xf32>
    %c0_11 = arith.constant 0 : index
    %c0_12 = arith.constant 0 : index
    %14 = vector.load %arg6[%c0_11, %c0_12] : memref<8x128xf32, #tpu.memory_space<vmem>>, vector<8x128xf32>
    tpu.vector_store %arg6[%c0_11, %c0_12], %13 {strides = array<i32>} : memref<8x128xf32, #tpu.memory_space<vmem>>, vector<8x128xf32>,
    return
  }
  func.func @transform_0(%arg0: i32) -> (i32, i32) {
    %c0_i32 = arith.constant 0 : i32
    %c0_i32_0 = arith.constant 0 : i32
    return %arg0, %c0_i32 : i32, i32
  }
  func.func @transform_1(%arg0: i32) -> (i32, i32) {
    %c0_i32 = arith.constant 0 : i32
    %c0_i32_0 = arith.constant 0 : i32
    %c0_i32_1 = arith.constant 0 : i32
    return %c0_i32, %c0_i32_0 : i32, i32
  }
  func.func @transform_2(%arg0: i32) -> (i32, i32) {
    %c0_i32 = arith.constant 0 : i32
    %c0_i32_0 = arith.constant 0 : i32
    %c0_i32_1 = arith.constant 0 : i32
    return %c0_i32, %c0_i32_0 : i32, i32
  }
  func.func @transform_3(%arg0: i32) -> (i32, i32) {
    %c0_i32 = arith.constant 0 : i32
    %c0_i32_0 = arith.constant 0 : i32
    %c0_i32_1 = arith.constant 0 : i32
    return %c0_i32, %c0_i32_0 : i32, i32
  }
  func.func @transform_4(%arg0: i32) -> (i32, i32) {
    %c0_i32 = arith.constant 0 : i32
    %c0_i32_0 = arith.constant 0 : i32
    %c0_i32_1 = arith.constant 0 : i32
    return %c0_i32, %c0_i32_0 : i32, i32
  }
  func.func @transform_5(%arg0: i32) -> (i32, i32) {
    %c0_i32 = arith.constant 0 : i32
    %c0_i32_0 = arith.constant 0 : i32
    return %c0_i32, %arg0 : i32, i32
  }
}

</mosaic_0001>

<bundles_post_ra>
// kernel: network_forward.1
= control target key start
LH: loop header
LB: loop body
LE: loop exit
PB: predicated region body
PF: predicated region fallthrough
CT: control target
= control target key end

     0   :  { %vm93_vm0 = vcmask 1044480   ;;  %vm44_vm1 = vcmask 39936   ;;  %v482_v17 = vmov 0.0|0.0   ;;  %vm483_vm2 = vmmov 0   ;;  %s603_s1 = inlined_call_operand.vmem [shape: f32[5,128], index: 1, kind: input, shape index: {}]   ;;  %s604_s0 = inlined_call_operand.vmem [shape: f32[128,5], index: 0, kind: input, shape index: {}]   ;;  %s605_s4 = inlined_call_operand.vmem [shape: f32[8,1], index: 4, kind: input, shape index: {}]   ;;  %s606_s2 = inlined_call_operand.vmem [shape: f32[1,128], index: 2, kind: input, shape index: {}]   ;;  %s607_s3 = inlined_call_operand.vmem [shape: f32[8,128], index: 3, kind: input, shape index: {}]   ;;  %s608_s5 = inlined_call_operand.vmem [shape: f32[8,128], index: 5, kind: output, shape index: {}]  }
   0x1   :  { %v36_v0 = vld [vmem:[%s603_s1] sm:$0x1f]  ;;  %v21_v2 = vld [vmem:[%s604_s0 + $0x8] sm:$0xff]  ;;  %v22_v3 = vld [vmem:[%s604_s0 + $0x10] sm:$0xff]  ;;  %453 = vmatprep.subr.bf16.mxu1 %v482_v17  ;;  %v484_v18 = vmov 0.0   ;;  %v485_v19 = vmov 0  }
   0x2   :  { %v20_v1 = vld [vmem:[%s604_s0] sm:$0xff]  ;;  %392 = vmatprep.subr.msk.mxu0 %vm93_vm0, %v36_v0  ;;  %v23_v4 = vld [vmem:[%s604_s0 + $0x18] sm:$0xff]  ;;  %v25_v6 = vld [vmem:[%s604_s0 + $0x28] sm:$0xff]  ;;  %450 = vmatprep.mubr.msk.f32.mxu1 %vm483_vm2, %v484_v18 }
   0x3   :  { %394 = vmatprep.mubr.msk.f32.mxu0 %vm44_vm1, %v20_v1  ;;  %393 = vmatpush3.msk.msra.mxu0 %vm93_vm0, %v36_v0  ;;  %v24_v5 = vld [vmem:[%s604_s0 + $0x20] sm:$0xff]  ;;  %v26_v7 = vld [vmem:[%s604_s0 + $0x30] sm:$0xff]  ;;  %v27_v8 = vld [vmem:[%s604_s0 + $0x38] sm:$0xff] }
   0x4   :  { %395 = vmatmul.mubr.msk.f32.vlgmr.msra.gmra.mrb[0].mxu0 %vm44_vm1, %v21_v2  ;;  %v28_v9 = vld [vmem:[%s604_s0 + $0x40] sm:$0xff]  ;;  %v29_v10 = vld [vmem:[%s604_s0 + $0x48] sm:$0xff]  ;;  %v30_v11 = vld [vmem:[%s604_s0 + $0x50] sm:$0xff]  ;;  %481 = vset.pattern.permute.xlu0 %v485_v19 }
   0x5   :  { %397 = vmatprep.mubr.msk.f32.mxu0 %vm44_vm1, %v22_v3  ;;  %v31_v12 = vld [vmem:[%s604_s0 + $0x58] sm:$0xff]  ;;  %v32_v13 = vld [vmem:[%s604_s0 + $0x60] sm:$0xff]  ;;  %v33_v14 = vld [vmem:[%s604_s0 + $0x68] sm:$0xff] }
   0x6   :  { %v34_v15 = vld [vmem:[%s604_s0 + $0x70] sm:$0xff]  ;;  %v35_v16 = vld [vmem:[%s604_s0 + $0x78] sm:$0xff]  ;;  %v259_v20 = vld [vmem:[%s605_s4] sm:$0xff] }
   0x7   :  { %262 = vperm.xlu0 %481, %v259_v20   ;;  %v340_v21 = vld [vmem:[%s606_s2] ss:$0 sm:$0xff] }
   0x8   :  { %398 = vmatmul.mubr.msk.f32.gmra.mrb[2].mxu0 %vm44_vm1, %v23_v4 }
   0x9   :  { %400 = vmatprep.mubr.msk.f32.mxu0 %vm44_vm1, %v24_v5 }
   0xc   :  { %401 = vmatmul.mubr.msk.f32.gmra.mrb[4].mxu0 %vm44_vm1, %v25_v6 }
   0xd   :  { %403 = vmatprep.mubr.msk.f32.mxu0 %vm44_vm1, %v26_v7 }
  0x10   :  { %404 = vmatmul.mubr.msk.f32.gmra.mrb[6].mxu0 %vm44_vm1, %v27_v8 }
  0x11   :  { %406 = vmatprep.mubr.msk.f32.mxu0 %vm44_vm1, %v28_v9 }
  0x14   :  { %407 = vmatmul.mubr.msk.f32.gmra.mrb[8].mxu0 %vm44_vm1, %v29_v10 }
  0x15   :  { %409 = vmatprep.mubr.msk.f32.mxu0 %vm44_vm1, %v30_v11 }
  0x18   :  { %410 = vmatmul.mubr.msk.f32.gmra.mrb[10].mxu0 %vm44_vm1, %v31_v12 }
  0x19   :  { %412 = vmatprep.mubr.msk.f32.mxu0 %vm44_vm1, %v32_v13 }
  0x1c   :  { %413 = vmatmul.mubr.msk.f32.gmra.mrb[12].mxu0 %vm44_vm1, %v33_v14  ;;  %v258_v14 = vld [vmem:[%s607_s3] sm:$0xff] }
  0x1d   :  { %415 = vmatprep.mubr.msk.f32.mxu0 %vm44_vm1, %v34_v15 }
  0x20   :  { %416 = vmatmul.mubr.msk.f32.gmra.mrb[14].mxu0 %vm44_vm1, %v35_v16 }
  0x86   :  { %v263_v15 = vpop.permute.xlu0 %262 }
  0xd7   :  { %v396_v22 = vpop.f32.mrb[0].mxu0 }
  0xd8   :  { %v169_v23 = vadd.f32 %v396_v22, %v340_v21  ;;  %v163_v24 = vpop.f32.mrb[1].mxu0 }
  0xd9   :  { %v164_v25 = vadd.f32 %v340_v21, %v163_v24 }
  0xda   :  { %v243_v26 = vmax.f32 %v169_v23, 0.0 }
  0xdb   :  { %v242_v27 = vmax.f32 %v164_v25, 0.0  ;;  %v399_v28 = vpop.f32.mrb[2].mxu0 }
  0xdc   :  { %v179_v29 = vadd.f32 %v399_v28, %v340_v21  ;;  %v173_v30 = vpop.f32.mrb[3].mxu0 }
  0xdd   :  { %v174_v31 = vadd.f32 %v340_v21, %v173_v30  ;;  %v454_v32 = vpack.c.bf16 %v243_v26, %v242_v27 }
  0xde   :  { %v245_v33 = vmax.f32 %v179_v29, 0.0 }
  0xdf   :  { %v244_v34 = vmax.f32 %v174_v31, 0.0  ;;  %455 = vmatpush3.bf16.xpose.msra.mxu1 %v454_v32  ;;  %v402_v35 = vpop.f32.mrb[4].mxu0 }
  0xe0   :  { %v189_v36 = vadd.f32 %v402_v35, %v340_v21  ;;  %456 = vmatprep.subr.bf16.mxu1 %v482_v17  ;;  %v183_v37 = vpop.f32.mrb[5].mxu0 }
  0xe1   :  { %v457_v38 = vpack.c.bf16 %v245_v33, %v244_v34  ;;  %v184_v39 = vadd.f32 %v340_v21, %v183_v37 }
  0xe2   :  { %v247_v40 = vmax.f32 %v189_v36, 0.0 }
  0xe3   :  { %v246_v41 = vmax.f32 %v184_v39, 0.0  ;;  %v405_v42 = vpop.f32.mrb[6].mxu0 }
  0xe4   :  { %v199_v43 = vadd.f32 %v405_v42, %v340_v21  ;;  %v193_v44 = vpop.f32.mrb[7].mxu0 }
  0xe5   :  { %v460_v45 = vpack.c.bf16 %v247_v40, %v246_v41  ;;  %v194_v46 = vadd.f32 %v340_v21, %v193_v44 }
  0xe6   :  { %v249_v47 = vmax.f32 %v199_v43, 0.0 }
  0xe7   :  { %458 = vmatpush3.bf16.xpose.msra.mxu1 %v457_v38  ;;  %v248_v48 = vmax.f32 %v194_v46, 0.0  ;;  %v408_v49 = vpop.f32.mrb[8].mxu0 }
  0xe8   :  { %459 = vmatprep.subr.bf16.mxu1 %v482_v17  ;;  %v209_v50 = vadd.f32 %v408_v49, %v340_v21  ;;  %v203_v51 = vpop.f32.mrb[9].mxu0 }
  0xe9   :  { %v463_v52 = vpack.c.bf16 %v249_v47, %v248_v48  ;;  %v204_v53 = vadd.f32 %v340_v21, %v203_v51 }
  0xea   :  { %v251_v54 = vmax.f32 %v209_v50, 0.0 }
  0xeb   :  { %v250_v55 = vmax.f32 %v204_v53, 0.0  ;;  %v411_v56 = vpop.f32.mrb[10].mxu0 }
  0xec   :  { %v219_v57 = vadd.f32 %v411_v56, %v340_v21  ;;  %v213_v58 = vpop.f32.mrb[11].mxu0 }
  0xed   :  { %v466_v59 = vpack.c.bf16 %v251_v54, %v250_v55  ;;  %v214_v60 = vadd.f32 %v340_v21, %v213_v58 }
  0xee   :  { %v253_v61 = vmax.f32 %v219_v57, 0.0 }
  0xef   :  { %461 = vmatpush3.bf16.xpose.msra.mxu1 %v460_v45  ;;  %v252_v62 = vmax.f32 %v214_v60, 0.0  ;;  %v414_v63 = vpop.f32.mrb[12].mxu0 }
  0xf0   :  { %462 = vmatprep.subr.bf16.mxu1 %v482_v17  ;;  %v229_v0 = vadd.f32 %v414_v63, %v340_v21  ;;  %v223_v1 = vpop.f32.mrb[13].mxu0 }
  0xf1   :  { %v469_v2 = vpack.c.bf16 %v253_v61, %v252_v62  ;;  %v224_v3 = vadd.f32 %v340_v21, %v223_v1 }
  0xf2   :  { %v255_v4 = vmax.f32 %v229_v0, 0.0 }
  0xf3   :  { %v254_v5 = vmax.f32 %v224_v3, 0.0  ;;  %v417_v6 = vpop.f32.mrb[14].mxu0 }
  0xf4   :  { %v239_v7 = vadd.f32 %v417_v6, %v340_v21  ;;  %v233_v8 = vpop.f32.mrb[15].mxu0 }
  0xf5   :  { %v472_v9 = vpack.c.bf16 %v255_v4, %v254_v5  ;;  %v234_v10 = vadd.f32 %v340_v21, %v233_v8 }
  0xf6   :  { %v257_v11 = vmax.f32 %v239_v7, 0.0 }
  0xf7   :  { %464 = vmatpush3.bf16.xpose.msra.mxu1 %v463_v52  ;;  %v256_v12 = vmax.f32 %v234_v10, 0.0 }
  0xf8   :  { %465 = vmatprep.subr.bf16.mxu1 %v482_v17 }
  0xf9   :  { %v475_v13 = vpack.c.bf16 %v257_v11, %v256_v12 }
  0xff   :  { %467 = vmatpush3.bf16.xpose.msra.mxu1 %v466_v59 }
 0x100   :  { %468 = vmatprep.subr.bf16.mxu1 %v482_v17 }
 0x107   :  { %470 = vmatpush3.bf16.xpose.msra.mxu1 %v469_v2 }
 0x108   :  { %471 = vmatprep.subr.bf16.mxu1 %v482_v17 }
 0x10f   :  { %473 = vmatpush3.bf16.xpose.msra.mxu1 %v472_v9 }
 0x110   :  { %474 = vmatprep.subr.bf16.mxu1 %v482_v17 }
 0x117   :  { %476 = vmatpush3.bf16.xpose.msra.mxu1 %v475_v13 }
 0x11e   :  { %451 = vmatmul.mubr.f32.vlgmr.msra.gmra.mrb[0].mxu1 %v258_v14 }
 0x1f1   :  { %v331_v16 = vpop.f32.mrb[0].mxu1 }
 0x1f2   :  { %v332_v18 = vadd.f32 %v331_v16, %v263_v15  ;;  %v452_v19 = vpop.f32.mrb[1].mxu1 }
 0x1f4   :  { %335 = vst [vmem:[%s608_s5] sm:$0xff] %v332_v18 }

</bundles_post_ra>
